<compile_context>
chip_gen: v5e
topology: v5e:2x2
jax: 0.10.0
libtpu: 0.0.40
codegen_flags: <defaults>
</compile_context>

<pallas_src>
import math
import functools

import jax
import jax.numpy as jnp
from jax.experimental import pallas as pl
from jax.experimental.pallas import tpu as pltpu

RANK = 5
LANES = 128
SUBLANES = 8
MAX_ROW_TILE = 2048     # 2048 rows x 128 lanes x 4 B = 1 MiB per f32 block
MIN_GRID_STEPS = 2      # keep >=2 blocks so v7x megacore can shard the grid


def _round_up(v, m):
    return ((v + m - 1) // m) * m


def _fourier_kernel(a_ref, b_ref, period_ref, x_ref, o_ref, *, rank):
    # a_ref: SMEM (rank+1,)   b_ref: SMEM (rank,)   period_ref: SMEM (1,)
    # x_ref/o_ref: VMEM (row_tile, 128) tiles (last grid block may be partial).
    a = [a_ref[i] for i in range(rank + 1)]           # hoisted scalar reads
    b = [b_ref[i] for i in range(rank)]
    w = jnp.float32(2.0 * math.pi) / period_ref[0]    # one scalar divide

    x = x_ref[...].astype(jnp.float32)                # cast in-kernel (bf16-safe)
    theta = x * w                                     # base angle t

    c1 = jnp.cos(theta)                               # only 2 transcendentals
    s1 = jnp.sin(theta)

    if rank == 0:
        out = jnp.full_like(x, a[0])
    else:
        # Harmonics 0 and 1 folded into the accumulator init.
        out = a[0] + a[1] * c1 + b[0] * s1

        if rank >= 2:
            two_c1 = c1 + c1
            # Harmonic 2: previous terms are cos(0)=1 / sin(0)=0, folded as constants.
            ck_prev, sk_prev = c1, s1
            ck = two_c1 * c1 - 1.0
            sk = two_c1 * s1
            out = out + a[2] * ck + b[1] * sk
            for i in range(3, rank + 1):
                ck, ck_prev = two_c1 * ck - ck_prev, ck
                sk, sk_prev = two_c1 * sk - sk_prev, sk
                out = out + a[i] * ck + b[i - 1] * sk

    o_ref[...] = out.astype(o_ref.dtype)


def fourier_act(x, acoeffs, bcoeffs, period, *, rank=RANK):
    """Elementwise Fourier activation. x: any shape; math in f32, output in x.dtype."""
    orig_shape = x.shape
    dtype = x.dtype
    flat = x.reshape(-1)
    n = flat.shape[0]

    # Lane-dense layout: rows of 128. Pad only to the lane width (never to a
    # full tile); the grid's last block may be partial (handled by pl.cdiv).
    rows = pl.cdiv(n, LANES)
    padded_n = rows * LANES
    if padded_n != n:
        flat = jnp.pad(flat, (0, padded_n - n))
    x2d = flat.reshape(rows, LANES)

    # Largest row tile (multiple of 8, up to ~1 MiB f32) while keeping at
    # least MIN_GRID_STEPS blocks for v7x dual-TensorCore sharding.
    row_tile = max(
        SUBLANES,
        min(MAX_ROW_TILE, _round_up(pl.cdiv(rows, MIN_GRID_STEPS), SUBLANES)),
    )
    grid = (pl.cdiv(rows, row_tile),)

    kernel = functools.partial(_fourier_kernel, rank=rank)

    # Advisory cost hint: 2 transcendentals/elem, ~8*rank VALU flops/elem,
    # read + write of the slab at its native width.
    itemsize = jnp.dtype(dtype).itemsize
    cost = pl.CostEstimate(
        flops=padded_n * max(8 * rank, 2),
        transcendentals=padded_n * 2,
        bytes_accessed=2 * padded_n * itemsize,
    )

    out2d = pl.pallas_call(
        kernel,
        out_shape=jax.ShapeDtypeStruct((rows, LANES), dtype),
        grid_spec=pltpu.PrefetchScalarGridSpec(
            num_scalar_prefetch=0,
            grid=grid,
            in_specs=[
                pl.BlockSpec(memory_space=pltpu.MemorySpace.SMEM),  # Acoeffs
                pl.BlockSpec(memory_space=pltpu.MemorySpace.SMEM),  # Bcoeffs
                pl.BlockSpec(memory_space=pltpu.MemorySpace.SMEM),  # period
                # TODO(synk): add pipeline_mode=pl.Buffered(3) here only if an
                # xprof trace shows exposed inbound DMA at large tiles.
                pl.BlockSpec((row_tile, LANES), lambda r: (r, 0)),  # x tile
            ],
            out_specs=pl.BlockSpec((row_tile, LANES), lambda r: (r, 0)),
        ),
        compiler_params=pltpu.CompilerParams(
            dimension_semantics=("parallel",)
        ),
        cost_estimate=cost,
    )(
        acoeffs.astype(jnp.float32),
        bcoeffs.astype(jnp.float32),
        jnp.reshape(period.astype(jnp.float32), (1,)),
        x2d,
    )

    if padded_n != n:
        out = out2d.reshape(-1)[:n].reshape(orig_shape)
    else:
        out = out2d.reshape(orig_shape)
    return out


def fourier_act_ref(x, acoeffs, bcoeffs, period, *, rank=RANK):
    out = acoeffs[0] * jnp.ones_like(x)
    for i in range(1, rank + 1):
        theta = 2.0 * math.pi * i * x / period
        out = out + acoeffs[i] * jnp.cos(theta) + bcoeffs[i - 1] * jnp.sin(theta)
    return out


if __name__ == "__main__":
    key = jax.random.PRNGKey(0)
    kx, ka, kb = jax.random.split(key, 3)

    # Input consistent with a CIFAR-10 conv activation: NCHW
    x = jax.random.normal(kx, (2, 4, 16, 16), dtype=jnp.float32)

    # Deterministic parameter init (matches shapes of torch.randn in __init__)
    acoeffs = jax.random.normal(ka, (RANK + 1,), dtype=jnp.float32)
    bcoeffs = jax.random.normal(kb, (RANK,), dtype=jnp.float32)
    period = jnp.float32(2.0 * math.pi)

    out = fourier_act(x, acoeffs, bcoeffs, period)
    out = jax.block_until_ready(out)

    ref = fourier_act_ref(x, acoeffs, bcoeffs, period)
    assert out.shape == x.shape and out.dtype == x.dtype
    assert jnp.max(jnp.abs(out - ref)) < 1e-4, "mismatch vs reference"

    print("KERNEL_OK")
</pallas_src>

<mosaic_0001>
module attributes {stable_mosaic.version = 11 : i64} {
  func.func @_fourier_kernel(%arg0: i32, %arg1: memref<6xf32, #tpu.memory_space<smem>>, %arg2: memref<5xf32, #tpu.memory_space<smem>>, %arg3: memref<1xf32, #tpu.memory_space<smem>>, %arg4: memref<8x128xf32, #tpu.memory_space<vmem>>, %arg5: memref<8x128xf32, #tpu.memory_space<vmem>>) attributes {dimension_semantics = [#tpu.dimension_semantics<parallel>], iteration_bounds = array<i64: 2>, scalar_prefetch = 0 : i64, scratch_operands = 0 : i64, tpu.core_type = #tpu.core_type<tc>, window_params = [{transform_indices = @transform_0, window_bounds = array<i64: 6>}, {transform_indices = @transform_1, window_bounds = array<i64: 5>}, {transform_indices = @transform_2, window_bounds = array<i64: 1>}, {transform_indices = @transform_3, window_bounds = array<i64: 8, 128>}, {transform_indices = @transform_4, window_bounds = array<i64: 8, 128>}]} {
    %c0 = arith.constant 0 : index
    %0 = memref.load %arg1[%c0] : memref<6xf32, #tpu.memory_space<smem>>
    %c1 = arith.constant 1 : index
    %1 = memref.load %arg1[%c1] : memref<6xf32, #tpu.memory_space<smem>>
    %c2 = arith.constant 2 : index
    %2 = memref.load %arg1[%c2] : memref<6xf32, #tpu.memory_space<smem>>
    %c3 = arith.constant 3 : index
    %3 = memref.load %arg1[%c3] : memref<6xf32, #tpu.memory_space<smem>>
    %c4 = arith.constant 4 : index
    %4 = memref.load %arg1[%c4] : memref<6xf32, #tpu.memory_space<smem>>
    %c5 = arith.constant 5 : index
    %5 = memref.load %arg1[%c5] : memref<6xf32, #tpu.memory_space<smem>>
    %c0_0 = arith.constant 0 : index
    %6 = memref.load %arg2[%c0_0] : memref<5xf32, #tpu.memory_space<smem>>
    %c1_1 = arith.constant 1 : index
    %7 = memref.load %arg2[%c1_1] : memref<5xf32, #tpu.memory_space<smem>>
    %c2_2 = arith.constant 2 : index
    %8 = memref.load %arg2[%c2_2] : memref<5xf32, #tpu.memory_space<smem>>
    %c3_3 = arith.constant 3 : index
    %9 = memref.load %arg2[%c3_3] : memref<5xf32, #tpu.memory_space<smem>>
    %c4_4 = arith.constant 4 : index
    %10 = memref.load %arg2[%c4_4] : memref<5xf32, #tpu.memory_space<smem>>
    %c0_5 = arith.constant 0 : index
    %11 = memref.load %arg3[%c0_5] : memref<1xf32, #tpu.memory_space<smem>>
    %cst = arith.constant 6.28318548 : f32
    %12 = arith.divf %cst, %11 : f32
    %c0_6 = arith.constant 0 : index
    %c0_7 = arith.constant 0 : index
    %13 = vector.load %arg4[%c0_6, %c0_7] : memref<8x128xf32, #tpu.memory_space<vmem>>, vector<8x128xf32>
    %14 = vector.broadcast %12 : f32 to vector<8x128xf32>
    %15 = arith.mulf %13, %14 : vector<8x128xf32>
    %16 = math.cos %15 : vector<8x128xf32>
    %17 = math.sin %15 : vector<8x128xf32>
    %18 = vector.broadcast %1 : f32 to vector<8x128xf32>
    %19 = arith.mulf %18, %16 : vector<8x128xf32>
    %20 = vector.broadcast %0 : f32 to vector<8x128xf32>
    %21 = arith.addf %20, %19 : vector<8x128xf32>
    %22 = vector.broadcast %6 : f32 to vector<8x128xf32>
    %23 = arith.mulf %22, %17 : vector<8x128xf32>
    %24 = arith.addf %21, %23 : vector<8x128xf32>
    %25 = arith.addf %16, %16 : vector<8x128xf32>
    %26 = arith.mulf %25, %16 : vector<8x128xf32>
    %cst_8 = arith.constant 1.000000e+00 : f32
    %27 = vector.broadcast %cst_8 : f32 to vector<8x128xf32>
    %28 = arith.subf %26, %27 : vector<8x128xf32>
    %29 = arith.mulf %25, %17 : vector<8x128xf32>
    %30 = vector.broadcast %2 : f32 to vector<8x128xf32>
    %31 = arith.mulf %30, %28 : vector<8x128xf32>
    %32 = arith.addf %24, %31 : vector<8x128xf32>
    %33 = vector.broadcast %7 : f32 to vector<8x128xf32>
    %34 = arith.mulf %33, %29 : vector<8x128xf32>
    %35 = arith.addf %32, %34 : vector<8x128xf32>
    %36 = arith.mulf %25, %28 : vector<8x128xf32>
    %37 = arith.subf %36, %16 : vector<8x128xf32>
    %38 = arith.mulf %25, %29 : vector<8x128xf32>
    %39 = arith.subf %38, %17 : vector<8x128xf32>
    %40 = vector.broadcast %3 : f32 to vector<8x128xf32>
    %41 = arith.mulf %40, %37 : vector<8x128xf32>
    %42 = arith.addf %35, %41 : vector<8x128xf32>
    %43 = vector.broadcast %8 : f32 to vector<8x128xf32>
    %44 = arith.mulf %43, %39 : vector<8x128xf32>
    %45 = arith.addf %42, %44 : vector<8x128xf32>
    %46 = arith.mulf %25, %37 : vector<8x128xf32>
    %47 = arith.subf %46, %28 : vector<8x128xf32>
    %48 = arith.mulf %25, %39 : vector<8x128xf32>
    %49 = arith.subf %48, %29 : vector<8x128xf32>
    %50 = vector.broadcast %4 : f32 to vector<8x128xf32>
    %51 = arith.mulf %50, %47 : vector<8x128xf32>
    %52 = arith.addf %45, %51 : vector<8x128xf32>
    %53 = vector.broadcast %9 : f32 to vector<8x128xf32>
    %54 = arith.mulf %53, %49 : vector<8x128xf32>
    %55 = arith.addf %52, %54 : vector<8x128xf32>
    %56 = arith.mulf %25, %47 : vector<8x128xf32>
    %57 = arith.subf %56, %37 : vector<8x128xf32>
    %58 = arith.mulf %25, %49 : vector<8x128xf32>
    %59 = arith.subf %58, %39 : vector<8x128xf32>
    %60 = vector.broadcast %5 : f32 to vector<8x128xf32>
    %61 = arith.mulf %60, %57 : vector<8x128xf32>
    %62 = arith.addf %55, %61 : vector<8x128xf32>
    %63 = vector.broadcast %10 : f32 to vector<8x128xf32>
    %64 = arith.mulf %63, %59 : vector<8x128xf32>
    %65 = arith.addf %62, %64 : vector<8x128xf32>
    %c0_9 = arith.constant 0 : index
    %c0_10 = arith.constant 0 : index
    %66 = vector.load %arg5[%c0_9, %c0_10] : memref<8x128xf32, #tpu.memory_space<vmem>>, vector<8x128xf32>
    tpu.vector_store %arg5[%c0_9, %c0_10], %65 {strides = array<i32>} : memref<8x128xf32, #tpu.memory_space<vmem>>, vector<8x128xf32>,
    return
  }
  func.func @transform_0(%arg0: i32) -> i32 {
    %c0_i32 = arith.constant 0 : i32
    %c0_i32_0 = arith.constant 0 : i32
    return %c0_i32 : i32
  }
  func.func @transform_1(%arg0: i32) -> i32 {
    %c0_i32 = arith.constant 0 : i32
    %c0_i32_0 = arith.constant 0 : i32
    return %c0_i32 : i32
  }
  func.func @transform_2(%arg0: i32) -> i32 {
    %c0_i32 = arith.constant 0 : i32
    %c0_i32_0 = arith.constant 0 : i32
    return %c0_i32 : i32
  }
  func.func @transform_3(%arg0: i32) -> (i32, i32) {
    %c0_i32 = arith.constant 0 : i32
    %c0_i32_0 = arith.constant 0 : i32
    return %arg0, %c0_i32 : i32, i32
  }
  func.func @transform_4(%arg0: i32) -> (i32, i32) {
    %c0_i32 = arith.constant 0 : i32
    %c0_i32_0 = arith.constant 0 : i32
    return %arg0, %c0_i32 : i32, i32
  }
}

</mosaic_0001>

<bundles_post_ra>
// kernel: tpu_custom_call.1
= control target key start
LH: loop header
LB: loop body
LE: loop exit
PB: predicated region body
PF: predicated region fallthrough
CT: control target
= control target key end

     0   :  { %s1252_s0 = inlined_call_operand.vmem [shape: f32[6], index: 0, kind: input, shape index: {}]   ;;  %s1253_s1 = inlined_call_operand.vmem [shape: f32[5], index: 1, kind: input, shape index: {}]   ;;  %s1254_s2 = inlined_call_operand.<no memory space> [shape: f32[1], index: 2, kind: input, shape index: {}]   ;;  %s1255_s3 = inlined_call_operand.hbm [shape: f32[16,128], index: 3, kind: input, shape index: {}]   ;;  %s1256_s4 = inlined_call_operand.hbm [shape: f32[16,128], index: 4, kind: output, shape index: {}]  }
   0x1   :  { %9 = sst [smem:[#allocation2]] %s1254_s2 }
   0x2   :  { %10 = vsyncpa [#allocation6], 0 }
   0x3   :  { %11 = vsyncpa [#allocation8], 0 }
   0x4   :  { %12 = vsyncpa [#allocation4], 0 }
   0x5   :  { %14 = vsyncpa [#allocation4 + $0x1], 0 }
   0x6   :  { %15 = vsyncpa [#allocation5], 0 }
   0x7   :  { %17 = vsyncpa [#allocation5 + $0x1], 0  ;;  %s1023_s17 = smov 0   ;;  %s1025_s18 = smov 0  }
   0x8   :  { %s1027_s19 = smov 0   ;;  %s1029_s20 = smov 0  }
   0x9 LB: > { %s1044_s2 = sadd.s32 4294967295, %s984_s20   ;;  %s740_s21 = sadd.s32 4294967294, %s984_s20   ;;  %s984_s20 = sphi %s1029_s20, %s1266_s20   ;;  %s980_s19 = sphi %s1027_s19, %s1265_s19   ;;  %s976_s18 = sphi %s1025_s18, %s1264_s18   ;;  %s972_s17 = sphi %s1023_s17, %s1263_s17  }
   0xa   : > { %p106_p0 = scmp.ne.s32.totalorder %s976_s18, %s972_s17  ;;  %p107_p1 = scmp.eq.s32.totalorder %s1044_s2, 0 }
   0xb   : > { %p130_p2 = scmp.eq.s32.totalorder %s1044_s2, 1  ;;  %p136_p3 = scmp.eq.s32.totalorder %s740_s21, 1 }
   0xc   : > { %p1053_p4 = por %p107_p1, %p106_p0  ;;  %p741_p5 = scmp.ge.s32.totalorder %s984_s20, 1 }
   0xd   : > { %p1058_p6 = por %p136_p3, %p106_p0  ;;  %p143_p7 = scmp.lt.s32.totalorder %s984_s20, 3 }
   0xe   : > { %s155_s26 = sshll.u32 %s1252_s0, 4  ;;  %s165_s30 = sshll.u32 %s1253_s1, 4  ;;  %s156_s26 = int_to_ptr.vmem [resolvable:$true] %s155_s26  ;;  %s166_s30 = int_to_ptr.vmem [resolvable:$true] %s165_s30 }
   0xf   : > { %p1066_p8 = pnand %p741_p5, %p143_p7  ;;  %s1079_s5 = sadd.s32 1, %s984_s20  }
  0x10   : > { %s90_s6 = ssub.s32 %s984_s20, %s1079_s5  ;;  %s986_s7 = smov [#allocation3]  }
  0x11   : > { %p786_p10 = pneg %p1066_p8  ;;  %s987_s8 = smov [#allocation7]  }
  0x12   : > { %p91_p12 = scmp.eq.s32.totalorder %s90_s6, 0  ;;  %s93_s9 = sadd.s32 1, %s980_s19 }
  0x13   : > { %p787_p11 = pnand %p786_p10, %p107_p1  ;;  %p100_p13 = scmp.ne.s32.totalorder %s980_s19, %s976_s18 }
  0x14   : > { %p101_p0 = scmp.eq.s32.totalorder %s984_s20, 0  ;;  %p803_p7 = scmp.lt.s32.totalorder %s984_s20, 2 }
  0x15   : > { %789 = dma.vmem_to_smem (!%p787_p11), %s156_s26, 16, %s986_s7, [#allocation6]  }
  0x16   : > { %792 = dma.vmem_to_smem (!%p787_p11), %s166_s30, 16, %s987_s8, [#allocation8]  }
  0x17   : > { %s1088_s10 = scalar_select %p91_p12, %s980_s19, %s93_s9  }
  0x18   : > { %p102_p3 = por %p101_p0, %p100_p13  ;;  %p1092_p5 = por %p130_p2, %p100_p13 }
  0x19   : > { %s179_s12 = sand.u32 1, %s980_s19   ;;  %s746_s14 = sshll.u32 %s984_s20, 3 }
  0x1a   : > { %s745_s13 = sshll.u32 %s179_s12, 3  ;;  %s187_s21 = scalar_lea.hbm %s1255_s3, %s746_s14 }
  0x1b   : > { %s183_s24 = scalar_lea.vmem [#allocation9], %s745_s13  ;;  %s189_s26 = sshll.u32 %s187_s21, 4  ;;  %s190_s26 = int_to_ptr.hbm [resolvable:$true] %s189_s26 }
  0x1c   : > { %s191_s25 = sshll.u32 %s183_s24, 4  ;;  %p1102_p10 = pnand %p803_p7, %p102_p3  ;;  %s192_s25 = int_to_ptr.vmem [resolvable:$true] %s191_s25 }
  0x1d   : > { %s180_s29 = scalar_lea.sflag [#allocation4], %s179_s12  ;;  %s880_s30 = sshra.s32 %s190_s26, 4  ;;  %s881_s30 = int_to_ptr.hbm [resolvable:$true] %s880_s30 }
  0x1e   : > { %s882_s6 = scalar_lea.hbm %s881_s30, 8  ;;  %p884_p11 = pneg %p1102_p10 }
  0x1f   : > { %p883_p2 = scmp.ne.s32.totalorder %s881_s30, %s882_s6  ;;  %s887_s9 = scalar_lea.hbm %s1255_s3, 16 }
  0x20   : > { %p888_p0 = scmp.lt.s32.totalorder %s881_s30, %s1255_s3  ;;  %p889_p3 = scmp.lt.s32.totalorder %s887_s9, %s882_s6 }
  0x21   : > { %p885_p12 = pnand %p884_p11, %p883_p2 }
  0x22   : > { %p890_p7 = por %p889_p3, %p888_p0 }
  0x23   : > { %p886_p13 = pneg %p885_p12 }
  0x25   : > { %p891_p9 = pnand %p890_p7, %p886_p13 }
  0x27   : > { %894 = shalt.err (!%p891_p9)
}
  0x28   : > { %796 = dma.hbm_to_vmem [thread:$0]  (!%p1102_p10), %s190_s26, 128, %s192_s25, %s180_s29  }
  0x29   : > { %200 = sbr.rel (%p1066_p8) target bundleno = 257 (0x101), region = 36 }
  0x2e   : > { %955 = dma.done.wait (%p107_p1), [#allocation6], 16  }
  0x2f   : > { %957 = vsyncadd (%p107_p1), [#allocation6], 4294967280 }
  0x30   : > { %959 = dma.done.wait (%p107_p1), [#allocation8], 16  }
  0x31   : > { %961 = vsyncadd (%p107_p1), [#allocation8], 4294967280  ;;  %s1127_s12 = sand.u32 1, %s976_s18  }
  0x32   : > { %s750_s27 = sshll.u32 %s1127_s12, 3  ;;  %s213_s15 = scalar_lea.sflag [#allocation4], %s1127_s12 }
  0x33   : > { %s216_s16 = scalar_lea.vmem [#allocation9], %s750_s27 }
  0x34   : > { %963 = dma.done.wait (%p1053_p4), %s213_s15, 128  }
  0x35   : > { %965 = vsyncadd (%p1053_p4), %s213_s15, 4294967168 }
  0x36   : > { %222 = sfence }
  0x37   : > { %s254_s21 = sld [smem:[#allocation2]]  ;;  %v272_v11 = vld [vmem:[%s216_s16] sm:$0xff]  ;;  %v988_v25 = vmov 683565275   ;;  %v989_v27 = vmov 2475754826  }
  0x38   : > { %v990_v30 = vmov 2131351028   ;;  %v991_v33 = vmov 2102212464   ;;  %v992_v36 = vmov 920167782  }
  0x39   : > { %v993_v39 = vmov 1326507024   ;;  %s1192_s25 = sld [smem:[#allocation3 + $0x1]]  ;;  %s769_s15 = sshll.u32 %s1044_s2, 3 }
  0x3a   : > { %s1194_s26 = sld [smem:[#allocation3]] }
  0x3b   : > { %s1196_s28 = sld [smem:[#allocation7]] }
  0x3c   : > { %s1198_s29 = sld [smem:[#allocation3 + $0x2]] }
  0x3d   : > { %v255_v0 = vstv %s254_s21  ;;  %s1201_s30 = sld [smem:[#allocation7 + $0x1]] }
  0x3e   : > { %848 = vrcp.f32 %v255_v0  ;;  %v267_v3 = vand.u32 2147483648, %v255_v0  ;;  %vm261_vm0 = vweird.f32 %v255_v0  ;;  %v265_v5 = vand.u32 2147483647, %v255_v0  ;;  %s1204_s6 = sld [smem:[#allocation3 + $0x3]] }
  0x3f   : > { %s1207_s7 = sld [smem:[#allocation7 + $0x2]] }
  0x40   : > { %v268_v7 = vor.u32 1.1754944e-38, %v267_v3  ;;  %vm266_vm3 = vcmp.eq.f32.partialorder %v265_v5, 8.507059e+37  ;;  %s1210_s8 = sld [smem:[#allocation3 + $0x4]] }
  0x41   : > { %s759_s9 = sld [smem:[#allocation7 + $0x3]] }
  0x42   : > { %s756_s13 = sld [smem:[#allocation3 + $0x5]] }
  0x43   : > { %s760_s14 = sld [smem:[#allocation7 + $0x4]] }
  0x44   : > { %v849_v1 = vpop.eup %848 }
  0x45   : > { %v257_v2 = vmul.f32 %v849_v1, %v255_v0  ;;  %vm262_vm1 = vweird.f32 %v849_v1 }
  0x46   : > { %vm263_vm2 = vmor %vm261_vm0, %vm262_vm1 }
  0x47   : > { %v258_v4 = vsub.f32 1.0, %v257_v2 }
  0x49   : > { %v259_v6 = vmul.f32 %v849_v1, %v258_v4 }
  0x4b   : > { %v260_v8 = vadd.f32 %v849_v1, %v259_v6 }
  0x4d   : > { %v264_v9 = vsel %vm263_vm2, %v849_v1, %v260_v8 }
  0x4e   : > { %v269_v10 = vsel %vm266_vm3, %v268_v7, %v264_v9  ;;  %v994_v9 = vmov 0  }
  0x4f   : > { %772 = vpush %v269_v10 }
  0x80   : > { %s773_s22 = spop %772 }
  0x81   : > { %s271_s24 = smul.f32 6.2831855, %s773_s22  ;;  %s643_s22 = scalar_lea.hbm %s1256_s4, %s769_s15 }
  0x83   : > { %v273_v12 = vstv %s271_s24  ;;  %s242_s24 = scalar_lea.vmem [#allocation10], %s750_s27  ;;  %s930_s27 = scalar_lea.hbm %s1256_s4, 16 }
  0x84   : > { %v1137_v13 = vmul.f32 %v273_v12, %v272_v11  ;;  %s645_s2 = sshll.u32 %s242_s24, 4  ;;  %s646_s2 = int_to_ptr.vmem [resolvable:$true] %s645_s2 }
  0x86   : > { %v278_v14 = vand.u32 2139095040, %v1137_v13  ;;  %v275_v17 = vand.u32 2147483647, %v1137_v13  ;;  %vm277_vm0 = vcmp.lt.s32.totalorder %v1137_v13, 0 }
  0x88   : > { %v279_v15 = vshrl.u32 %v278_v14, 23  ;;  %v282_v19 = vand.u32 8388607, %v275_v17  ;;  %vm276_vm1 = vcmp.le.f32.partialorder %v275_v17, 0.7853982 }
  0x8a   : > { %v761_v16 = vadd.s32 4294967169, %v279_v15  ;;  %v283_v23 = vor.u32 8388608, %v282_v19 }
  0x8c   : > { %v285_v18 = vadd.s32 1, %v761_v16  ;;  %v1154_v46 = vshll.u32 %v283_v23, 8 }
  0x8e   : > { %vm286_vm4 = vcmp.gt.s32.totalorder %v285_v18, 0  ;;  %v324_v55 = vand.u32 65535, %v1154_v46  ;;  %v325_v56 = vshrl.u32 %v1154_v46, 16 }
  0x8f   : > { %v287_v20 = vsel %vm286_vm4, %v285_v18, 0 }
  0x90   : > { %v289_v21 = vand.u32 31, %v287_v20  ;;  %v1145_v24 = vshrl.u32 %v287_v20, 5 }
  0x92   : > { %v1143_v22 = vsub.s32 32, %v289_v21  ;;  %v292_v26 = vshll.u32 %v988_v25, %v289_v21  ;;  %v295_v28 = vshll.u32 %v989_v27, %v289_v21  ;;  %v298_v32 = vshll.u32 %v990_v30, %v289_v21 }
  0x93   : > { %v301_v35 = vshll.u32 %v991_v33, %v289_v21  ;;  %v304_v38 = vshll.u32 %v992_v36, %v289_v21  ;;  %vm307_vm5 = vcmp.lt.s32.totalorder %v1145_v24, 1  ;;  %vm310_vm6 = vcmp.lt.s32.totalorder %v1145_v24, 4 }
  0x94   : > { %v293_v29 = vshrl.u32 %v989_v27, %v1143_v22  ;;  %v296_v31 = vshrl.u32 %v990_v30, %v1143_v22  ;;  %v299_v34 = vshrl.u32 %v991_v33, %v1143_v22  ;;  %v302_v37 = vshrl.u32 %v992_v36, %v1143_v22 }
  0x95   : > { %v305_v40 = vshrl.u32 %v993_v39, %v1143_v22  ;;  %vm309_vm7 = vcmp.lt.s32.totalorder %v1145_v24, 3  ;;  %vm308_vm8 = vcmp.lt.s32.totalorder %v1145_v24, 2  ;;  %v291_v20 = vshrl.u32 %v988_v25, %v1143_v22 }
  0x96   : > { %v294_v41 = vor.u32 %v293_v29, %v292_v26  ;;  %v297_v42 = vor.u32 %v296_v31, %v295_v28  ;;  %v300_v43 = vor.u32 %v299_v34, %v298_v32  ;;  %v303_v44 = vor.u32 %v302_v37, %v301_v35 }
  0x97   : > { %v306_v45 = vor.u32 %v305_v40, %v304_v38 }
  0x98   : > { %v315_v47 = vsel %vm307_vm5, %v294_v41, %v297_v42  ;;  %v319_v48 = vsel %vm307_vm5, %v297_v42, %v300_v43  ;;  %v316_v49 = vsel %vm310_vm6, %v303_v44, 920167782  ;;  %v312_v16 = vsel %vm310_vm6, %v300_v43, 2102212464 }
  0x99   : > { %v320_v50 = vsel %vm310_vm6, %v306_v45, 1326507024  ;;  %v317_v51 = vsel %vm309_vm7, %v300_v43, %v316_v49  ;;  %v311_v29 = vsel %vm307_vm5, %v291_v20, %v294_v41  ;;  %v313_v30 = vsel %vm309_vm7, %v297_v42, %v312_v16 }
  0x9a   : > { %v321_v52 = vsel %vm309_vm7, %v303_v44, %v320_v50  ;;  %v318_v53 = vsel %vm308_vm8, %v315_v47, %v317_v51  ;;  %v314_v22 = vsel %vm308_vm8, %v311_v29, %v313_v30 }
  0x9b   : > { %v322_v54 = vsel %vm308_vm8, %v319_v48, %v321_v52  ;;  %v348_v59 = vand.u32 65535, %v318_v53  ;;  %v349_v60 = vshrl.u32 %v318_v53, 16  ;;  %v368_v38 = vmul.u32 %v1154_v46, %v314_v22 }
  0x9c   : > { %v326_v57 = vand.u32 65535, %v322_v54  ;;  %v327_v58 = vshrl.u32 %v322_v54, 16  ;;  %vm418_vm8 = vweird.f32 %v1137_v13 }
  0x9d   : > { %v351_v63 = vmul.u32 %v349_v60, %v324_v55  ;;  %v352_v0 = vmul.u32 %v348_v59, %v325_v56  ;;  %v350_v4 = vmul.u32 %v348_v59, %v324_v55  ;;  %v353_v8 = vmul.u32 %v349_v60, %v325_v56 }
  0x9e   : > { %v329_v61 = vmul.u32 %v327_v58, %v324_v55  ;;  %v330_v62 = vmul.u32 %v326_v57, %v325_v56  ;;  %v328_v1 = vmul.u32 %v326_v57, %v324_v55  ;;  %v331_v3 = vmul.u32 %v327_v58, %v325_v56 }
  0x9f   : > { %v354_v5 = vshll.u32 %v351_v63, 16  ;;  %v356_v11 = vshll.u32 %v352_v0, 16  ;;  %v355_v27 = vshrl.u32 %v351_v63, 16  ;;  %v357_v33 = vshrl.u32 %v352_v0, 16 }
  0xa0   : > { %v332_v2 = vshll.u32 %v329_v61, 16  ;;  %v334_v6 = vshll.u32 %v330_v62, 16  ;;  %v333_v21 = vshrl.u32 %v329_v61, 16  ;;  %v335_v31 = vshrl.u32 %v330_v62, 16 }
  0xa1   : > { %vm358_vm10 = vc.u32 %v350_v4, %v354_v5  ;;  %v360_v12 = vadd.s32 %v354_v5, %v350_v4 }
  0xa2   : > { %vm336_vm9 = vc.u32 %v328_v1, %v332_v2  ;;  %v338_v7 = vadd.s32 %v332_v2, %v328_v1  ;;  %v359_v15 = vsel %vm358_vm10, 1, %v994_v9 }
  0xa3   : > { %v337_v10 = vsel %vm336_vm9, 1, %v994_v9  ;;  %v361_v19 = vadd.s32 %v359_v15, %v353_v8  ;;  %vm362_vm12 = vc.u32 %v360_v12, %v356_v11  ;;  %v364_v36 = vadd.s32 %v360_v12, %v356_v11 }
  0xa4   : > { %v339_v14 = vadd.s32 %v337_v10, %v331_v3  ;;  %vm340_vm11 = vc.u32 %v338_v7, %v334_v6  ;;  %v363_v26 = vsel %vm362_vm12, 1, %v994_v9 }
  0xa5   : > { %v341_v18 = vsel %vm340_vm11, 1, %v994_v9  ;;  %v365_v28 = vadd.s32 %v363_v26, %v361_v19  ;;  %v584_v26 = vstv %s1192_s25  ;;  %s647_s25 = sshll.u32 %s643_s22, 4  ;;  %s648_s25 = int_to_ptr.hbm [resolvable:$true] %s647_s25 }
  0xa6   : > { %v343_v23 = vadd.s32 %v341_v18, %v339_v14 }
  0xa7   : > { %v366_v34 = vadd.s32 %v365_v28, %v355_v27 }
  0xa8   : > { %v344_v32 = vadd.s32 %v343_v23, %v333_v21 }
  0xa9   : > { %v367_v25 = vadd.s32 %v366_v34, %v357_v33  ;;  %v586_v34 = vstv %s1194_s26  ;;  %s633_s26 = scalar_lea.sflag [#allocation5], %s1127_s12 }
  0xaa   : > { %v345_v35 = vadd.s32 %v344_v32, %v335_v31 }
  0xab   : > { %v371_v37 = vadd.s32 1, %v367_v25 }
  0xac   : > { %vm370_vm13 = vc.u32 %v345_v35, %v364_v36  ;;  %v369_v24 = vadd.s32 %v364_v36, %v345_v35 }
  0xad   : > { %v372_v39 = vsel %vm370_vm13, %v371_v37, %v367_v25  ;;  %v588_v25 = vstv %s1196_s28  ;;  %s924_s28 = sshra.s32 %s648_s25, 4  ;;  %s925_s28 = int_to_ptr.hbm [resolvable:$true] %s924_s28 }
  0xae   : > { %v373_v40 = vadd.s32 %v372_v39, %v368_v38  ;;  %p931_p9 = scmp.lt.s32.totalorder %s925_s28, %s1256_s4 }
  0xb0   : > { %v374_v41 = vadd.s32 536870912, %v373_v40 }
  0xb2   : > { %v375_v43 = vshrl.u32 %v374_v41, 30 }
  0xb4   : > { %v376_v44 = vshll.u32 %v375_v43, 30  ;;  %v399_v63 = vsub.s32 4, %v375_v43 }
  0xb6   : > { %v377_v42 = vsub.s32 %v373_v40, %v376_v44  ;;  %v400_v4 = vsel %vm277_vm0, %v399_v63, %v375_v43  ;;  %v598_v44 = vstv %s1201_s30 }
  0xb7   : > { %v402_v7 = vsel %vm276_vm1, 0, %v400_v4 }
  0xb8   : > { %vm378_vm14 = vcmp.lt.s32.totalorder %v377_v42, 0  ;;  %v379_v45 = vsub.s32 0, %v377_v42  ;;  %v573_v12 = vadd.s32 3, %v402_v7  ;;  %v419_v18 = vand.u32 3, %v402_v7 }
  0xb9   : > { %v628_v7 = vstv %s760_s14 }
  0xba   : > { %v380_v47 = vsel %vm378_vm14, %v379_v45, %v377_v42  ;;  %v574_v19 = vand.u32 3, %v573_v12  ;;  %vm420_vm2 = vcmp.lt.s32.totalorder %v419_v18, 2  ;;  %vm421_vm3 = vcmp.eq.s32.totalorder %v419_v18, 0 }
  0xbb   : > { %v381_v48 = vclz %v380_v47  ;;  %vm424_vm4 = vcmp.eq.s32.totalorder %v419_v18, 2 }
  0xbc   : > { %vm575_vm5 = vcmp.lt.s32.totalorder %v574_v19, 2  ;;  %vm576_vm6 = vcmp.eq.s32.totalorder %v574_v19, 0  ;;  %vm579_vm7 = vcmp.eq.s32.totalorder %v574_v19, 2 }
  0xbd   : > { %v762_v49 = vadd.s32 4294967294, %v381_v48 }
  0xbf   : > { %vm763_vm15 = vcmp.lt.s32.totalorder %v762_v49, 0 }
  0xc0   : > { %v384_v50 = vsel %vm763_vm15, 0, %v762_v49  ;;  %v605_v49 = vstv %s1204_s6 }
  0xc1   : > { %v385_v51 = vsub.s32 32, %v384_v50  ;;  %v389_v52 = vsub.s32 4294967266, %v384_v50  ;;  %v386_v53 = vshll.u32 %v377_v42, %v384_v50 }
  0xc3   : > { %v387_v54 = vshrl.u32 %v369_v24, %v385_v51  ;;  %v390_v55 = vadd.s32 127, %v389_v52 }
  0xc5   : > { %v388_v46 = vor.u32 %v387_v54, %v386_v53  ;;  %v391_v56 = vshll.u32 %v390_v55, 23  ;;  %v608_v53 = vstv %s1207_s7 }
  0xc7   : > { %v392_v57 = vor.u32 4788187, %v391_v56  ;;  %v395_v59 = vcvt.s32.f32 %v388_v46 }
  0xc9   : > { %v393_v58 = vand.u32 2147483647, %v392_v57  ;;  %v615_v57 = vstv %s1210_s8 }
  0xcb   : > { %v396_v60 = vmul.f32 %v395_v59, %v393_v58 }
  0xcd   : > { %v397_v61 = vxor.u32 2147483648, %v396_v60 }
  0xcf   : > { %v398_v62 = vsel %vm277_vm0, %v397_v61, %v396_v60 }
  0xd0   : > { %v401_v0 = vsel %vm276_vm1, %v1137_v13, %v398_v62  ;;  %v595_v13 = vstv %s1198_s29  ;;  %v618_v62 = vstv %s759_s9  ;;  %s926_s29 = scalar_lea.hbm %s925_s28, 8 }
  0xd1   : > { %v403_v1 = vmul.f32 %v401_v0, %v401_v0  ;;  %p927_p1 = scmp.ne.s32.totalorder %s925_s28, %s926_s29  ;;  %p932_p10 = scmp.lt.s32.totalorder %s930_s27, %s926_s29 }
  0xd3   : > { %v404_v2 = vmul.f32 -0.001358992, %v403_v1  ;;  %v411_v3 = vmul.f32 -0.00019511016, %v403_v1  ;;  %p928_p4 = pnand %p927_p1, %p1092_p5  ;;  %p933_p2 = por %p932_p10, %p931_p9 }
  0xd5   : > { %v405_v5 = vadd.f32 0.041655596, %v404_v2  ;;  %v412_v6 = vadd.f32 0.008332121, %v411_v3  ;;  %v625_v2 = vstv %s756_s13  ;;  %p929_p8 = pneg %p928_p4 }
  0xd7   : > { %v406_v8 = vmul.f32 %v405_v5, %v403_v1  ;;  %v413_v9 = vmul.f32 %v412_v6, %v403_v1  ;;  %p934_p11 = pnand %p933_p2, %p929_p8 }
  0xd9   : > { %v407_v10 = vadd.f32 -0.4999988, %v406_v8  ;;  %v414_v11 = vadd.f32 -0.16666654, %v413_v9 }
  0xdb   : > { %v408_v14 = vmul.f32 %v407_v10, %v403_v1  ;;  %v415_v17 = vmul.f32 %v414_v11, %v403_v1 }
  0xdd   : > { %v409_v15 = vadd.f32 1.0, %v408_v14  ;;  %v416_v16 = vadd.f32 1.0, %v415_v17 }
  0xdf   : > { %v417_v20 = vmul.f32 %v416_v16, %v401_v0  ;;  %v425_v21 = vxor.u32 2147483648, %v409_v15 }
  0xe1   : > { %v422_v23 = vxor.u32 2147483648, %v417_v20  ;;  %v426_v28 = vsel %vm424_vm4, %v425_v21, %v417_v20  ;;  %v581_v30 = vsel %vm579_vm7, %v425_v21, %v417_v20 }
  0xe3   : > { %v423_v27 = vsel %vm421_vm3, %v409_v15, %v422_v23  ;;  %v578_v29 = vsel %vm576_vm6, %v409_v15, %v422_v23 }
  0xe4   : > { %v427_v31 = vsel %vm420_vm2, %v423_v27, %v426_v28  ;;  %v582_v32 = vsel %vm575_vm5, %v578_v29, %v581_v30 }
  0xe5   : > { %v428_v33 = vsel %vm418_vm8, nan, %v427_v31  ;;  %v583_v22 = vsel %vm418_vm8, nan, %v582_v32 }
  0xe6   : > { %v585_v35 = vmul.f32 %v584_v26, %v428_v33  ;;  %v591_v36 = vadd.f32 %v428_v33, %v428_v33  ;;  %v589_v40 = vmul.f32 %v588_v25, %v583_v22 }
  0xe8   : > { %v587_v37 = vadd.f32 %v586_v34, %v585_v35  ;;  %v592_v38 = vmul.f32 %v591_v36, %v428_v33  ;;  %v594_v39 = vmul.f32 %v591_v36, %v583_v22 }
  0xea   : > { %v767_v41 = vadd.f32 -1.0, %v592_v38  ;;  %v603_v43 = vmul.f32 %v594_v39, %v591_v36  ;;  %v590_v42 = vadd.f32 %v589_v40, %v587_v37  ;;  %v599_v24 = vmul.f32 %v598_v44, %v594_v39 }
  0xec   : > { %v596_v45 = vmul.f32 %v767_v41, %v595_v13  ;;  %v601_v47 = vmul.f32 %v767_v41, %v591_v36  ;;  %v604_v48 = vsub.f32 %v603_v43, %v583_v22 }
  0xee   : > { %v597_v50 = vadd.f32 %v596_v45, %v590_v42  ;;  %v602_v51 = vsub.f32 %v601_v47, %v428_v33  ;;  %v613_v52 = vmul.f32 %v604_v48, %v591_v36  ;;  %v609_v59 = vmul.f32 %v608_v53, %v604_v48 }
  0xf0   : > { %v600_v54 = vadd.f32 %v599_v24, %v597_v50  ;;  %v606_v55 = vmul.f32 %v605_v49, %v602_v51  ;;  %v611_v46 = vmul.f32 %v602_v51, %v591_v36  ;;  %v614_v56 = vsub.f32 %v613_v52, %v594_v39 }
  0xf2   : > { %v607_v58 = vadd.f32 %v606_v55, %v600_v54  ;;  %v612_v60 = vsub.f32 %v611_v46, %v767_v41  ;;  %v623_v61 = vmul.f32 %v614_v56, %v591_v36  ;;  %v619_v4 = vmul.f32 %v618_v62, %v614_v56 }
  0xf4   : > { %v610_v63 = vadd.f32 %v609_v59, %v607_v58  ;;  %v616_v0 = vmul.f32 %v615_v57, %v612_v60  ;;  %v621_v1 = vmul.f32 %v612_v60, %v591_v36  ;;  %v624_v6 = vsub.f32 %v623_v61, %v604_v48 }
  0xf6   : > { %v617_v3 = vadd.f32 %v616_v0, %v610_v63  ;;  %v622_v5 = vsub.f32 %v621_v1, %v602_v51  ;;  %v629_v11 = vmul.f32 %v628_v7, %v624_v6 }
  0xf8   : > { %v620_v8 = vadd.f32 %v619_v4, %v617_v3  ;;  %v626_v9 = vmul.f32 %v625_v2, %v622_v5 }
  0xfa   : > { %v627_v10 = vadd.f32 %v626_v9, %v620_v8 }
  0xfc   : > { %v630_v12 = vadd.f32 %v629_v11, %v627_v10 }
  0xfe   : > { %631 = vst [vmem:[%s242_s24] sm:$0xff] %v630_v12 }
  0xff   : > { %937 = shalt.err (!%p934_p11)
}
 0x100   : > { %784 = dma.vmem_to_hbm [thread:$0]  (%p1092_p5), %s646_s2, 128, %s648_s25, %s633_s26  }
 0x101 PF: > { %s659_s12 = sand.u32 1, %s972_s17   ;;  %p1262_p12 = scmp.ge.s32.totalorder %s984_s20, 2 }
 0x102   : > { %s660_s9 = scalar_lea.sflag [#allocation5], %s659_s12 }
 0x103   : > { %p798_p13 = pnand %p1262_p12, %p1058_p6 }
 0x105   : > { %p799_p0 = pneg %p798_p13 }
 0x107   : > { %967 = dma.done.wait (%p799_p0), %s660_s9, 128  }
 0x108   : > { %969 = vsyncadd (%p799_p0), %s660_s9, 4294967168  ;;  %p20_p3 = scmp.ge.s32.totalorder %s1079_s5, 4   ;;  %s1263_s17 = smov %s976_s18 }
 0x109   : > { %s1264_s18 = smov %s980_s19  ;;  %s1265_s19 = smov %s1088_s10 }
 0x10a   : > { %s1266_s20 = smov %s1079_s5  ;;  %22 = sbr.rel (!%p20_p3) target bundleno = 9 (0x9), region = 90 }
 0x10f   :  { %666 = vsyncpa [#allocation4], 1 }
 0x110   :  { %668 = vsyncpa [#allocation4 + $0x1], 1 }
 0x111   :  { %669 = vsyncpa [#allocation5], 1 }
 0x112   :  { %671 = vsyncpa [#allocation5 + $0x1], 1 }
 0x113   :  { %672 = vsyncpa [#allocation6], 1 }
 0x114   :  { %674 = vsyncpa [#allocation6 + $0x1], 1 }
 0x115   :  { %675 = vsyncpa [#allocation8], 1 }

</bundles_post_ra>
